<compile_context>
chip_gen: v7x
topology: tpu7x:2x2x1
jax: 0.10.0
libtpu: 0.0.40
codegen_flags: <defaults>
</compile_context>

<pallas_src>
import jax
import jax.numpy as jnp
from jax.experimental import pallas as pl
from jax.experimental.pallas import tpu as pltpu

_C1 = 0.01 ** 2
_C2 = 0.03 ** 2


def _ssim_kernel(x_ref, y_ref, qw_ref, o_ref):
    # x_ref / y_ref: (T, H, W) unpadded planes in VMEM.
    # qw_ref: (W, W) reflection-fused horizontal 3-tap pooling matrix.
    # Compute in f32 regardless of input dtype (variance terms cancel in bf16).
    x = x_ref[...].astype(jnp.float32)
    y = y_ref[...].astype(jnp.float32)
    qw = qw_ref[...]
    T, H, W = x.shape

    def vpad_reflect(a):
        # ReflectionPad2d(1) along H only (mirror about the edge, edge not repeated).
        return jnp.concatenate([a[:, 1:2, :], a, a[:, H - 2:H - 1, :]], axis=1)

    inv9 = jnp.float32(1.0 / 9.0)

    def pool3(ap):
        # ap: (T, H+2, W) vertically reflection-padded.
        # Vertical 3-tap: three sublane-offset adds on the VPU.
        v = ap[:, 0:H, :] + ap[:, 1:H + 1, :] + ap[:, 2:H + 2, :]          # (T, H, W)
        # Horizontal reflection-pad + 3-tap fused into one banded matmul on the
        # (otherwise idle) MXU -> no lane-shifted slices / W->W+2 concat relayout.
        h = jnp.dot(v.reshape(T * H, W), qw,
                    preferred_element_type=jnp.float32).reshape(T, H, W)
        return h * inv9

    xp = vpad_reflect(x)
    yp = vpad_reflect(y)

    mu_x = pool3(xp)
    mu_y = pool3(yp)
    mu_xx = mu_x * mu_x
    mu_yy = mu_y * mu_y
    mu_xy = mu_x * mu_y

    # pool3 is linear: sigma_x + sigma_y = pool3(x^2 + y^2) - (mu_x^2 + mu_y^2),
    # so only 4 pool3 calls are needed in total.
    sigma_sum = pool3(xp * xp + yp * yp) - (mu_xx + mu_yy)
    sigma_xy = pool3(xp * yp) - mu_xy

    ssim_n = (2.0 * mu_xy + _C1) * (2.0 * sigma_xy + _C2)
    ssim_d = (mu_xx + mu_yy + _C1) * (sigma_sum + _C2)

    res = jnp.clip((1.0 - ssim_n / ssim_d) * 0.5, 0.0, 1.0)
    o_ref[...] = res.astype(o_ref.dtype)


def _reflect_pool_matrix(n):
    """(n, n) f32 matrix Q with Q[src, out] = multiplicity of source index `src`
    in the 3-tap sum at output index `out` after ReflectionPad(1) on that axis."""
    idx = jnp.arange(n)
    src = idx[:, None]
    out = idx[None, :]
    band = (jnp.abs(src - out) <= 1).astype(jnp.float32)
    fix = (((src == 1) & (out == 0)) |
           ((src == n - 2) & (out == n - 1))).astype(jnp.float32)
    return band + fix


def _vmem_budget_bytes():
    # Generation-aware scoped-VMEM request, always well below physical VMEM
    # (v5e/v6e: 128 MiB -> 48 MiB; v7x: 64 MiB per TensorCore -> 32 MiB).
    try:
        cap = int(pltpu.get_tpu_info().vmem_capacity_bytes)
    except Exception:
        cap = 64 * 1024 * 1024
    return int(min(max(cap // 2, 16 * 1024 * 1024), 48 * 1024 * 1024))


def ssim(x, y):
    """x, y: (B, C, H, W). Returns (B, C, H, W) SSIM loss map (same dtype as x)."""
    B, C, H, W = x.shape
    if H < 2 or W < 2:
        raise ValueError("ReflectionPad2d(1) requires H >= 2 and W >= 2.")
    N = B * C
    x2 = x.reshape(N, H, W)
    y2 = y.reshape(N, H, W)
    qw = _reflect_pool_matrix(W)

    # Plane-batch size T:
    #  * fits a realistic VMEM footprint (~12-16 f32 plane temporaries plus
    #    double-buffered I/O ~ 28 plane-equivalents, with sublane/lane padding),
    #  * keeps >= ~4 grid steps when possible (pipelining + both v7x cores),
    #  * divides N exactly (no jnp.pad / output-slice HBM passes).
    budget_bytes = _vmem_budget_bytes()
    h_pad = ((H + 2 + 7) // 8) * 8
    w_pad = ((W + 127) // 128) * 128
    per_plane_bytes = 28 * h_pad * w_pad * 4
    t_budget = max(1, budget_bytes // per_plane_bytes)
    t_steps = max(1, N // min(N, 4))
    t_cap = max(1, min(N, t_budget, t_steps))
    T = next(d for d in range(t_cap, 0, -1) if N % d == 0)
    n_blocks = N // T

    # TODO(synk): add H-row tiling with a 1-row halo so a single very large plane
    # never has to fit v7x's 64 MiB VMEM in one block.
    # TODO(synk): for W << 128 (e.g. this 16x16 test) only W/128 of each lane is
    # used and output stores are masked; packing 128//W planes along the lane
    # axis with a block-diagonal pooling matrix would recover lane density at
    # the cost of wrapper-side transposes.

    out = pl.pallas_call(
        _ssim_kernel,
        out_shape=jax.ShapeDtypeStruct((N, H, W), x.dtype),
        grid=(n_blocks,),
        in_specs=[
            pl.BlockSpec((T, H, W), lambda i: (i, 0, 0)),
            pl.BlockSpec((T, H, W), lambda i: (i, 0, 0)),
            pl.BlockSpec((W, W), lambda i: (0, 0)),   # same block every step -> stays resident
        ],
        out_specs=pl.BlockSpec((T, H, W), lambda i: (i, 0, 0)),
        compiler_params=pltpu.CompilerParams(
            dimension_semantics=("parallel",),
            vmem_limit_bytes=budget_bytes,
        ),
    )(x2, y2, qw)
    return out.reshape(B, C, H, W)


def _ssim_ref(x, y):
    """Pure-JAX reference with identical semantics (for correctness check)."""
    xp = jnp.pad(x, ((0, 0), (0, 0), (1, 1), (1, 1)), mode="reflect")
    yp = jnp.pad(y, ((0, 0), (0, 0), (1, 1), (1, 1)), mode="reflect")
    H, W = x.shape[2], x.shape[3]

    def pool3(a):
        s = jnp.zeros(x.shape, a.dtype)
        for di in range(3):
            for dj in range(3):
                s = s + a[:, :, di:di + H, dj:dj + W]
        return s / 9.0

    mu_x, mu_y = pool3(xp), pool3(yp)
    sig_x = pool3(xp * xp) - mu_x * mu_x
    sig_y = pool3(yp * yp) - mu_y * mu_y
    sig_xy = pool3(xp * yp) - mu_x * mu_y
    n = (2 * mu_x * mu_y + _C1) * (2 * sig_xy + _C2)
    d = (mu_x ** 2 + mu_y ** 2 + _C1) * (sig_x + sig_y + _C2)
    return jnp.clip((1 - n / d) / 2, 0.0, 1.0)


if __name__ == "__main__":
    key = jax.random.PRNGKey(0)
    kx, ky = jax.random.split(key)
    B, C, H, W = 2, 4, 16, 16
    x = jax.random.uniform(kx, (B, C, H, W), dtype=jnp.float32)
    y = jax.random.uniform(ky, (B, C, H, W), dtype=jnp.float32)

    out = jax.block_until_ready(ssim(x, y))

    ref = _ssim_ref(x, y)
    assert out.shape == (B, C, H, W)
    assert jnp.max(jnp.abs(out - ref)) < 1e-5
    print("KERNEL_OK")
</pallas_src>

<mosaic_0001>
module attributes {stable_mosaic.version = 11 : i64} {
  func.func @_ssim_kernel(%arg0: i32, %arg1: memref<2x16x16xf32, #tpu.memory_space<vmem>>, %arg2: memref<2x16x16xf32, #tpu.memory_space<vmem>>, %arg3: memref<16x16xf32, #tpu.memory_space<vmem>>, %arg4: memref<2x16x16xf32, #tpu.memory_space<vmem>>) attributes {dimension_semantics = [#tpu.dimension_semantics<parallel>], iteration_bounds = array<i64: 4>, scalar_prefetch = 0 : i64, scratch_operands = 0 : i64, tpu.core_type = #tpu.core_type<tc>, window_params = [{transform_indices = @transform_0, window_bounds = array<i64: 2, 16, 16>}, {transform_indices = @transform_1, window_bounds = array<i64: 2, 16, 16>}, {pipeline_mode = #tpu.pipeline_mode<synchronous>, transform_indices = @transform_2, window_bounds = array<i64: 16, 16>}, {transform_indices = @transform_3, window_bounds = array<i64: 2, 16, 16>}]} {
    %c0 = arith.constant 0 : index
    %c0_0 = arith.constant 0 : index
    %c0_1 = arith.constant 0 : index
    %0 = vector.load %arg1[%c0, %c0_0, %c0_1] : memref<2x16x16xf32, #tpu.memory_space<vmem>>, vector<2x16x16xf32>
    %c0_2 = arith.constant 0 : index
    %c0_3 = arith.constant 0 : index
    %c0_4 = arith.constant 0 : index
    %1 = vector.load %arg2[%c0_2, %c0_3, %c0_4] : memref<2x16x16xf32, #tpu.memory_space<vmem>>, vector<2x16x16xf32>
    %c0_5 = arith.constant 0 : index
    %c0_6 = arith.constant 0 : index
    %2 = vector.load %arg3[%c0_5, %c0_6] : memref<16x16xf32, #tpu.memory_space<vmem>>, vector<16x16xf32>
    %3 = vector.extract_strided_slice %0 {offsets = [0, 1, 0], sizes = [2, 1, 16], strides = [1, 1, 1]} : vector<2x16x16xf32> to vector<2x1x16xf32>
    %4 = vector.extract_strided_slice %0 {offsets = [0, 14, 0], sizes = [2, 1, 16], strides = [1, 1, 1]} : vector<2x16x16xf32> to vector<2x1x16xf32>
    %5 = tpu.concatenate %3, %0, %4 in 1 : vector<2x1x16xf32>, vector<2x16x16xf32>, vector<2x1x16xf32> -> vector<2x18x16xf32>
    %6 = vector.extract_strided_slice %1 {offsets = [0, 1, 0], sizes = [2, 1, 16], strides = [1, 1, 1]} : vector<2x16x16xf32> to vector<2x1x16xf32>
    %7 = vector.extract_strided_slice %1 {offsets = [0, 14, 0], sizes = [2, 1, 16], strides = [1, 1, 1]} : vector<2x16x16xf32> to vector<2x1x16xf32>
    %8 = tpu.concatenate %6, %1, %7 in 1 : vector<2x1x16xf32>, vector<2x16x16xf32>, vector<2x1x16xf32> -> vector<2x18x16xf32>
    %9 = vector.extract_strided_slice %5 {offsets = [0, 0, 0], sizes = [2, 16, 16], strides = [1, 1, 1]} : vector<2x18x16xf32> to vector<2x16x16xf32>
    %10 = vector.extract_strided_slice %5 {offsets = [0, 1, 0], sizes = [2, 16, 16], strides = [1, 1, 1]} : vector<2x18x16xf32> to vector<2x16x16xf32>
    %11 = arith.addf %9, %10 : vector<2x16x16xf32>
    %12 = vector.extract_strided_slice %5 {offsets = [0, 2, 0], sizes = [2, 16, 16], strides = [1, 1, 1]} : vector<2x18x16xf32> to vector<2x16x16xf32>
    %13 = arith.addf %11, %12 : vector<2x16x16xf32>
    %14 = vector.shape_cast %13 : vector<2x16x16xf32> to vector<32x16xf32>
    %cst = arith.constant dense<0.000000e+00> : vector<32x16xf32>
    %15 = tpu.matmul %14, %2, %cst {dimension_numbers = #tpu.dot_dimension_numbers<[1], [0], [0], [1], [0, 0, 1, 1], [], []>} : vector<32x16xf32>, vector<16x16xf32>, vector<32x16xf32> -> vector<32x16xf32>
    %16 = vector.shape_cast %15 : vector<32x16xf32> to vector<2x16x16xf32>
    %cst_7 = arith.constant 0.111111112 : f32
    %17 = vector.broadcast %cst_7 : f32 to vector<2x16x16xf32>
    %18 = arith.mulf %16, %17 : vector<2x16x16xf32>
    %19 = vector.extract_strided_slice %8 {offsets = [0, 0, 0], sizes = [2, 16, 16], strides = [1, 1, 1]} : vector<2x18x16xf32> to vector<2x16x16xf32>
    %20 = vector.extract_strided_slice %8 {offsets = [0, 1, 0], sizes = [2, 16, 16], strides = [1, 1, 1]} : vector<2x18x16xf32> to vector<2x16x16xf32>
    %21 = arith.addf %19, %20 : vector<2x16x16xf32>
    %22 = vector.extract_strided_slice %8 {offsets = [0, 2, 0], sizes = [2, 16, 16], strides = [1, 1, 1]} : vector<2x18x16xf32> to vector<2x16x16xf32>
    %23 = arith.addf %21, %22 : vector<2x16x16xf32>
    %24 = vector.shape_cast %23 : vector<2x16x16xf32> to vector<32x16xf32>
    %cst_8 = arith.constant dense<0.000000e+00> : vector<32x16xf32>
    %25 = tpu.matmul %24, %2, %cst_8 {dimension_numbers = #tpu.dot_dimension_numbers<[1], [0], [0], [1], [0, 0, 1, 1], [], []>} : vector<32x16xf32>, vector<16x16xf32>, vector<32x16xf32> -> vector<32x16xf32>
    %26 = vector.shape_cast %25 : vector<32x16xf32> to vector<2x16x16xf32>
    %cst_9 = arith.constant 0.111111112 : f32
    %27 = vector.broadcast %cst_9 : f32 to vector<2x16x16xf32>
    %28 = arith.mulf %26, %27 : vector<2x16x16xf32>
    %29 = arith.mulf %18, %18 : vector<2x16x16xf32>
    %30 = arith.mulf %28, %28 : vector<2x16x16xf32>
    %31 = arith.mulf %18, %28 : vector<2x16x16xf32>
    %32 = arith.mulf %5, %5 : vector<2x18x16xf32>
    %33 = arith.mulf %8, %8 : vector<2x18x16xf32>
    %34 = arith.addf %32, %33 : vector<2x18x16xf32>
    %35 = vector.extract_strided_slice %34 {offsets = [0, 0, 0], sizes = [2, 16, 16], strides = [1, 1, 1]} : vector<2x18x16xf32> to vector<2x16x16xf32>
    %36 = vector.extract_strided_slice %34 {offsets = [0, 1, 0], sizes = [2, 16, 16], strides = [1, 1, 1]} : vector<2x18x16xf32> to vector<2x16x16xf32>
    %37 = arith.addf %35, %36 : vector<2x16x16xf32>
    %38 = vector.extract_strided_slice %34 {offsets = [0, 2, 0], sizes = [2, 16, 16], strides = [1, 1, 1]} : vector<2x18x16xf32> to vector<2x16x16xf32>
    %39 = arith.addf %37, %38 : vector<2x16x16xf32>
    %40 = vector.shape_cast %39 : vector<2x16x16xf32> to vector<32x16xf32>
    %cst_10 = arith.constant dense<0.000000e+00> : vector<32x16xf32>
    %41 = tpu.matmul %40, %2, %cst_10 {dimension_numbers = #tpu.dot_dimension_numbers<[1], [0], [0], [1], [0, 0, 1, 1], [], []>} : vector<32x16xf32>, vector<16x16xf32>, vector<32x16xf32> -> vector<32x16xf32>
    %42 = vector.shape_cast %41 : vector<32x16xf32> to vector<2x16x16xf32>
    %cst_11 = arith.constant 0.111111112 : f32
    %43 = vector.broadcast %cst_11 : f32 to vector<2x16x16xf32>
    %44 = arith.mulf %42, %43 : vector<2x16x16xf32>
    %45 = arith.addf %29, %30 : vector<2x16x16xf32>
    %46 = arith.subf %44, %45 : vector<2x16x16xf32>
    %47 = arith.mulf %5, %8 : vector<2x18x16xf32>
    %48 = vector.extract_strided_slice %47 {offsets = [0, 0, 0], sizes = [2, 16, 16], strides = [1, 1, 1]} : vector<2x18x16xf32> to vector<2x16x16xf32>
    %49 = vector.extract_strided_slice %47 {offsets = [0, 1, 0], sizes = [2, 16, 16], strides = [1, 1, 1]} : vector<2x18x16xf32> to vector<2x16x16xf32>
    %50 = arith.addf %48, %49 : vector<2x16x16xf32>
    %51 = vector.extract_strided_slice %47 {offsets = [0, 2, 0], sizes = [2, 16, 16], strides = [1, 1, 1]} : vector<2x18x16xf32> to vector<2x16x16xf32>
    %52 = arith.addf %50, %51 : vector<2x16x16xf32>
    %53 = vector.shape_cast %52 : vector<2x16x16xf32> to vector<32x16xf32>
    %cst_12 = arith.constant dense<0.000000e+00> : vector<32x16xf32>
    %54 = tpu.matmul %53, %2, %cst_12 {dimension_numbers = #tpu.dot_dimension_numbers<[1], [0], [0], [1], [0, 0, 1, 1], [], []>} : vector<32x16xf32>, vector<16x16xf32>, vector<32x16xf32> -> vector<32x16xf32>
    %55 = vector.shape_cast %54 : vector<32x16xf32> to vector<2x16x16xf32>
    %cst_13 = arith.constant 0.111111112 : f32
    %56 = vector.broadcast %cst_13 : f32 to vector<2x16x16xf32>
    %57 = arith.mulf %55, %56 : vector<2x16x16xf32>
    %58 = arith.subf %57, %31 : vector<2x16x16xf32>
    %cst_14 = arith.constant 2.000000e+00 : f32
    %59 = vector.broadcast %cst_14 : f32 to vector<2x16x16xf32>
    %60 = arith.mulf %59, %31 : vector<2x16x16xf32>
    %cst_15 = arith.constant 9.99999974E-5 : f32
    %61 = vector.broadcast %cst_15 : f32 to vector<2x16x16xf32>
    %62 = arith.addf %60, %61 : vector<2x16x16xf32>
    %cst_16 = arith.constant 2.000000e+00 : f32
    %63 = vector.broadcast %cst_16 : f32 to vector<2x16x16xf32>
    %64 = arith.mulf %63, %58 : vector<2x16x16xf32>
    %cst_17 = arith.constant 8.99999984E-4 : f32
    %65 = vector.broadcast %cst_17 : f32 to vector<2x16x16xf32>
    %66 = arith.addf %64, %65 : vector<2x16x16xf32>
    %67 = arith.mulf %62, %66 : vector<2x16x16xf32>
    %68 = arith.addf %29, %30 : vector<2x16x16xf32>
    %cst_18 = arith.constant 9.99999974E-5 : f32
    %69 = vector.broadcast %cst_18 : f32 to vector<2x16x16xf32>
    %70 = arith.addf %68, %69 : vector<2x16x16xf32>
    %cst_19 = arith.constant 8.99999984E-4 : f32
    %71 = vector.broadcast %cst_19 : f32 to vector<2x16x16xf32>
    %72 = arith.addf %46, %71 : vector<2x16x16xf32>
    %73 = arith.mulf %70, %72 : vector<2x16x16xf32>
    %74 = arith.divf %67, %73 : vector<2x16x16xf32>
    %cst_20 = arith.constant 1.000000e+00 : f32
    %75 = vector.broadcast %cst_20 : f32 to vector<2x16x16xf32>
    %76 = arith.subf %75, %74 : vector<2x16x16xf32>
    %cst_21 = arith.constant 5.000000e-01 : f32
    %77 = vector.broadcast %cst_21 : f32 to vector<2x16x16xf32>
    %78 = arith.mulf %76, %77 : vector<2x16x16xf32>
    %cst_22 = arith.constant 0.000000e+00 : f32
    %cst_23 = arith.constant 1.000000e+00 : f32
    %79 = vector.broadcast %cst_22 : f32 to vector<2x16x16xf32>
    %80 = arith.maximumf %79, %78 : vector<2x16x16xf32>
    %81 = vector.broadcast %cst_23 : f32 to vector<2x16x16xf32>
    %82 = arith.minimumf %81, %80 : vector<2x16x16xf32>
    %c0_24 = arith.constant 0 : index
    %c0_25 = arith.constant 0 : index
    %c0_26 = arith.constant 0 : index
    %83 = vector.load %arg4[%c0_24, %c0_25, %c0_26] : memref<2x16x16xf32, #tpu.memory_space<vmem>>, vector<2x16x16xf32>
    tpu.vector_store %arg4[%c0_24, %c0_25, %c0_26], %82 {strides = array<i32>} : memref<2x16x16xf32, #tpu.memory_space<vmem>>, vector<2x16x16xf32>,
    return
  }
  func.func @transform_0(%arg0: i32) -> (i32, i32, i32) {
    %c0_i32 = arith.constant 0 : i32
    %c0_i32_0 = arith.constant 0 : i32
    %c0_i32_1 = arith.constant 0 : i32
    return %arg0, %c0_i32, %c0_i32_0 : i32, i32, i32
  }
  func.func @transform_1(%arg0: i32) -> (i32, i32, i32) {
    %c0_i32 = arith.constant 0 : i32
    %c0_i32_0 = arith.constant 0 : i32
    %c0_i32_1 = arith.constant 0 : i32
    return %arg0, %c0_i32, %c0_i32_0 : i32, i32, i32
  }
  func.func @transform_2(%arg0: i32) -> (i32, i32) {
    %c0_i32 = arith.constant 0 : i32
    %c0_i32_0 = arith.constant 0 : i32
    %c0_i32_1 = arith.constant 0 : i32
    return %c0_i32, %c0_i32_0 : i32, i32
  }
  func.func @transform_3(%arg0: i32) -> (i32, i32, i32) {
    %c0_i32 = arith.constant 0 : i32
    %c0_i32_0 = arith.constant 0 : i32
    %c0_i32_1 = arith.constant 0 : i32
    return %arg0, %c0_i32, %c0_i32_0 : i32, i32, i32
  }
}

</mosaic_0001>

<bundles_post_ra>
// kernel: tpu_custom_call.1
= control target key start
LH: loop header
LB: loop body
LE: loop exit
PB: predicated region body
PF: predicated region fallthrough
CT: control target
= control target key end

     0   :  { %s1928_s0 = inlined_call_operand.hbm [shape: f32[8,16,16], index: 0, kind: input, shape index: {}]   ;;  %s1929_s1 = inlined_call_operand.hbm [shape: f32[8,16,16], index: 1, kind: input, shape index: {}]   ;;  %s1930_s2 = inlined_call_operand.hbm [shape: f32[16,16], index: 2, kind: input, shape index: {}]   ;;  %s1931_s3 = inlined_call_operand.hbm [shape: f32[8,16,16], index: 3, kind: output, shape index: {}]  }
   0x1   :  { %1939 = sst [smem:[#allocation13_spill]] %s1928_s0 }
   0x2   :  { %1940 = sst [smem:[#allocation14_spill]] %s1930_s2 }
   0x3   :  { %8 = vsyncpa [#allocation3], 0 }
   0x4   :  { %10 = vsyncpa [#allocation3 + $0x1], 0 }
   0x5   :  { %11 = vsyncpa [#allocation6], 0 }
   0x6   :  { %13 = vsyncpa [#allocation6 + $0x1], 0 }
   0x7   :  { %14 = vsyncpa [#allocation4], 0 }
   0x8   :  { %16 = vsyncpa [#allocation4 + $0x1], 0  ;;  %s1505_s12 = smov 0   ;;  %s1507_s13 = smov 0  }
   0x9   :  { %s1509_s14 = smov 0   ;;  %s1511_s15 = smov 0  }
   0xa LB: > { %s1526_s16 = sadd.s32 4294967295, %s1475_s15   ;;  %s1114_s17 = sadd.s32 4294967294, %s1475_s15   ;;  %s1475_s15 = sphi %s1511_s15, %s1960_s15   ;;  %s1471_s14 = sphi %s1509_s14, %s1959_s14   ;;  %s1467_s13 = sphi %s1507_s13, %s1958_s13   ;;  %s1463_s12 = sphi %s1505_s12, %s1957_s12  }
   0xb   : > { %p42_p0 = scmp.ne.s32.totalorder %s1467_s13, %s1463_s12  ;;  %p1932_p1 = scmp.eq.s32.totalorder %s1526_s16, 0 }
   0xc   : > { %p119_p3 = scmp.eq.s32.totalorder %s1114_s17, 3  ;;  %p1115_p5 = scmp.ge.s32.totalorder %s1475_s15, 1 }
   0xd   : > { %p1535_p4 = por %p1932_p1, %p42_p0  ;;  %p126_p7 = scmp.lt.s32.totalorder %s1475_s15, 5 }
   0xe   : > { %p1540_p6 = por %p119_p3, %p42_p0  ;;  %s1477_s21 = smov [#allocation7]  }
   0xf   : > { %s1941_s18 = scalar_select %p1535_p4, 1, 0 }
  0x10   : > { %s1942_s19 = scalar_select %p1540_p6, 1, 0 }
  0x11   : > { %p1545_p8 = pnand %p1115_p5, %p126_p7  ;;  %s138_s22 = sshll.u32 %s1477_s21, 4  ;;  %s139_s22 = int_to_ptr.vmem [resolvable:$true] %s138_s22 }
  0x12   : > { %s1558_s24 = sadd.s32 1, %s1475_s15   ;;  %s29_s25 = sadd.s32 1, %s1471_s14 }
  0x13   : > { %s1943_s20 = scalar_select %p1545_p8, 1, 0 }
  0x14   : > { %p1249_p9 = pneg %p1545_p8  ;;  %s26_s26 = ssub.s32 %s1475_s15, %s1558_s24 }
  0x15   : > { %s1945_s2 = sld [smem:[#allocation14_spill]] }
  0x16   : > { %p1553_p10 = pnand %p1249_p9, %p1932_p1 }
  0x18   : > { %p1315_p12 = pneg %p1553_p10 }
  0x1b   : > { %s1313_s29 = scalar_lea.hbm %s1945_s2, 256 }
  0x1c   : > { %p1314_p11 = scmp.ne.s32.totalorder %s1945_s2, %s1313_s29  ;;  %p1320_p3 = scmp.lt.u32.totalorder %s1313_s29, %s1945_s2 }
  0x1e   : > { %p1316_p13 = pnand %p1315_p12, %p1314_p11 }
  0x20   : > { %p1317_p0 = pneg %p1316_p13 }
  0x22   : > { %p1322_p5 = pnand %p1320_p3, %p1317_p0 }
  0x24   : > { %1325 = shalt.err (!%p1322_p5)
}
  0x25   : > { %s1326_s7 = scalar_lea.vmem %s139_s22, 256  ;;  %p1334_p2 = scmp.lt.s32.totalorder %s139_s22, %s139_s22 }
  0x26   : > { %p1327_p7 = scmp.ne.s32.totalorder %s139_s22, %s1326_s7  ;;  %p1335_p6 = scmp.lt.s32.totalorder %s1326_s7, %s1326_s7 }
  0x28   : > { %p1329_p9 = pnand %p1327_p7, %p1315_p12  ;;  %p1336_p4 = por %p1335_p6, %p1334_p2 }
  0x2a   : > { %p1330_p1 = pneg %p1329_p9 }
  0x2c   : > { %p1337_p8 = pnand %p1336_p4, %p1330_p1 }
  0x2e   : > { %1340 = shalt.err (!%p1337_p8)
}
  0x2f   : > { %s1935_s8 = smov 128   ;;  %s1937_s9 = smov 8  }
  0x30   : > { %1252 = dma.hbm_to_vmem [thread:$0]  (!%p1553_p10), %s1945_s2, 256, %s139_s22, [#allocation6], %s1935_s8, %s1935_s8, %s1937_s9  }
  0x31   : > { %p27_p1 = scmp.eq.s32.totalorder %s26_s26, 0  ;;  %p36_p2 = scmp.ne.s32.totalorder %s1471_s14, %s1467_s13 }
  0x32   : > { %p37_p4 = scmp.eq.s32.totalorder %s1475_s15, 0  ;;  %p1265_p6 = scmp.lt.s32.totalorder %s1475_s15, 4 }
  0x33   : > { %s1587_s17 = scalar_select %p27_p1, %s1471_s14, %s29_s25  }
  0x34   : > { %p38_p8 = por %p37_p4, %p36_p2  ;;  %p1946_p11 = scmp.eq.s32.totalorder %s1526_s16, 3 }
  0x35   : > { %s152_s23 = sand.u32 1, %s1471_s14   ;;  %s1154_s27 = sshll.u32 %s1475_s15, 9 }
  0x36   : > { %p1591_p12 = por %p1946_p11, %p36_p2  ;;  %s1597_s28 = sshll.u32 %s152_s23, 5 }
  0x37   : > { %s1948_s0 = sld [smem:[#allocation13_spill]]  ;;  %s156_s25 = scalar_lea.vmem [#allocation2], %s1597_s28 }
  0x38   : > { %s164_s26 = sshll.u32 %s156_s25, 4  ;;  %p1605_p10 = pnand %p1265_p6, %p38_p8  ;;  %s1609_s26 = int_to_ptr.vmem [resolvable:$true] %s164_s26 }
  0x39   : > { %s1614_s7 = scalar_lea.hbm %s1929_s1, %s1154_s27  ;;  %s1616_s10 = scalar_lea.sflag [#allocation3], %s152_s23 }
  0x3a   : > { %p1343_p0 = pneg %p1605_p10 }
  0x3d   : > { %s1602_s22 = scalar_lea.hbm %s1948_s0, %s1154_s27  ;;  %s1346_s25 = scalar_lea.hbm %s1948_s0, 2048 }
  0x3e   : > { %s1341_s11 = scalar_lea.hbm %s1602_s22, 512  ;;  %p1347_p7 = scmp.lt.u32.totalorder %s1602_s22, %s1948_s0 }
  0x3f   : > { %p1342_p13 = scmp.ne.s32.totalorder %s1602_s22, %s1341_s11  ;;  %p1348_p9 = scmp.lt.u32.totalorder %s1346_s25, %s1341_s11 }
  0x40   : > { %p1350_p2 = scmp.lt.u32.totalorder %s1341_s11, %s1602_s22 }
  0x41   : > { %p1344_p3 = pnand %p1343_p0, %p1342_p13  ;;  %p1349_p1 = por %p1348_p9, %p1347_p7 }
  0x43   : > { %p1345_p5 = pneg %p1344_p3  ;;  %p1351_p4 = por %p1350_p2, %p1349_p1 }
  0x45   : > { %p1352_p6 = pnand %p1351_p4, %p1345_p5 }
  0x47   : > { %1355 = shalt.err (!%p1352_p6)
}
  0x48   : > { %s1356_s23 = scalar_lea.vmem %s1609_s26, 512  ;;  %s1480_s27 = smov [#allocation2]  }
  0x49   : > { %p1357_p8 = scmp.ne.s32.totalorder %s1609_s26, %s1356_s23  ;;  %s1361_s5 = sshll.u32 %s1480_s27, 4  ;;  %s1362_s5 = int_to_ptr.vmem [resolvable:$false] %s1361_s5 }
  0x4a   : > { %s1363_s8 = scalar_lea.vmem %s1362_s5, 1024  ;;  %p1364_p3 = scmp.lt.s32.totalorder %s1609_s26, %s1362_s5 }
  0x4b   : > { %p1359_p11 = pnand %p1357_p8, %p1343_p0  ;;  %p1365_p7 = scmp.lt.s32.totalorder %s1363_s8, %s1356_s23 }
  0x4d   : > { %p1360_p13 = pneg %p1359_p11  ;;  %p1366_p9 = por %p1365_p7, %p1364_p3 }
  0x4f   : > { %p1367_p1 = pnand %p1366_p9, %p1360_p13 }
  0x51   : > { %1370 = shalt.err (!%p1367_p1)
}
  0x52   : > { %s1950_s9 = smov 8   ;;  %s1951_s6 = smov 128  }
  0x53   : > { %1256 = dma.hbm_to_vmem [thread:$0]  (!%p1605_p10), %s1602_s22, 512, %s1609_s26, %s1616_s10, %s1951_s6, %s1951_s6, %s1950_s9  }
  0x54   : > { %s178_s11 = scalar_lea.vmem [#allocation5], %s1597_s28  ;;  %s174_s30 = sand.u32 1, %s1475_s15  }
  0x55   : > { %s186_s29 = sshll.u32 %s178_s11, 4  ;;  %s1651_s25 = scalar_lea.sflag [#allocation6], %s174_s30  ;;  %s1649_s29 = int_to_ptr.vmem [resolvable:$true] %s186_s29 }
  0x56   : > { %s1371_s23 = scalar_lea.hbm %s1614_s7, 512  ;;  %s1376_s8 = scalar_lea.hbm %s1929_s1, 2048 }
  0x57   : > { %p1372_p5 = scmp.ne.s32.totalorder %s1614_s7, %s1371_s23  ;;  %p1377_p6 = scmp.lt.u32.totalorder %s1614_s7, %s1929_s1 }
  0x58   : > { %p1378_p8 = scmp.lt.u32.totalorder %s1376_s8, %s1371_s23  ;;  %p1380_p13 = scmp.lt.u32.totalorder %s1371_s23, %s1614_s7 }
  0x59   : > { %p1374_p2 = pnand %p1372_p5, %p1343_p0 }
  0x5a   : > { %p1379_p11 = por %p1378_p8, %p1377_p6 }
  0x5b   : > { %p1375_p4 = pneg %p1374_p2 }
  0x5c   : > { %p1381_p3 = por %p1380_p13, %p1379_p11 }
  0x5e   : > { %p1382_p7 = pnand %p1381_p3, %p1375_p4 }
  0x60   : > { %1385 = shalt.err (!%p1382_p7)
}
  0x61   : > { %s1386_s28 = scalar_lea.vmem %s1649_s29, 512  ;;  %s1481_s22 = smov [#allocation5]  }
  0x62   : > { %p1387_p9 = scmp.ne.s32.totalorder %s1649_s29, %s1386_s28  ;;  %s1391_s26 = sshll.u32 %s1481_s22, 4  ;;  %s1392_s26 = int_to_ptr.vmem [resolvable:$false] %s1391_s26 }
  0x63   : > { %s1393_s0 = scalar_lea.vmem %s1392_s26, 1024  ;;  %p1394_p2 = scmp.lt.s32.totalorder %s1649_s29, %s1392_s26 }
  0x64   : > { %p1389_p1 = pnand %p1387_p9, %p1343_p0  ;;  %p1395_p6 = scmp.lt.s32.totalorder %s1393_s0, %s1386_s28 }
  0x66   : > { %p1390_p5 = pneg %p1389_p1  ;;  %p1396_p8 = por %p1395_p6, %p1394_p2 }
  0x68   : > { %p1397_p11 = pnand %p1396_p8, %p1390_p5 }
  0x6a   : > { %1400 = shalt.err (!%p1397_p11)
}
  0x6b   : > { %1259 = dma.hbm_to_vmem [thread:$0]  (!%p1605_p10), %s1614_s7, 512, %s1649_s29, %s1651_s25, %s1951_s6, %s1951_s6, %s1950_s9  }
  0x6c   : > { %p1952_p0 = scmp.ne.s32.totalorder %s1943_s20, 0 }
  0x6d   : > { %s1683_s2 = sand.u32 (!%p1952_p0), 1, %s1467_s13   ;;  %p1953_p4 = scmp.ne.s32.totalorder (!%p1952_p0), %s1941_s18, 0 }
  0x6e   : > { %198 = sbr.rel (%p1952_p0) target bundleno = 428 (0x1ac), region = 32  ;;  %s1686_s10 = sshll.u32 (!%p1952_p0), %s1683_s2, 5 }
  0x6f   : > { %s201_s4 = scalar_lea.sflag (!%p1952_p0), [#allocation3], %s1683_s2  ;;  %s1690_s11 = scalar_lea.vmem (!%p1952_p0), [#allocation2], %s1686_s10 }
  0x75   : > { %1446 = dma.done.wait (%p1953_p4), %s201_s4, 512  }
  0x76   : > { %1448 = vsyncadd (%p1953_p4), %s201_s4, 4294966784  ;;  %s209_s20 = sand.u32 1, %s1526_s16   ;;  %s1698_s9 = scalar_lea.vmem [#allocation5], %s1686_s10 }
  0x77   : > { %s210_s7 = scalar_lea.sflag [#allocation6], %s209_s20 }
  0x78   : > { %1450 = dma.done.wait (%p1953_p4), %s210_s7, 512  }
  0x79   : > { %1452 = vsyncadd (%p1953_p4), %s210_s7, 4294966784  ;;  %p1954_p10 = scmp.eq.s32.totalorder %s1526_s16, 0 }
  0x7b   : > { %1454 = dma.done.wait (%p1954_p10), [#allocation6], 256   ;;  %p1955_p13 = pmov %p1954_p10 }
  0x7c   : > { %v256_v0 = vld [vmem:[#allocation7] sm:$0xff]  ;;  %v257_v1 = vld [vmem:[#allocation7 + $0x8] sm:$0xff]  ;;  %vm266_vm0 = vcmask 1040384   ;;  %vm319_vm1 = vcmask 1046528   ;;  %vm338_vm2 = vcmask 1045504   ;;  %vm357_vm3 = vcmask 130048  }
  0x7d   : > { %1456 = vsyncadd (%p1955_p13), [#allocation6], 4294967040  ;;  %v248_v2 = vld [vmem:[%s1690_s11] sm:$0xff]  ;;  %v1709_v3 = vpack.c.bf16 %v257_v1, %v256_v0  ;;  %v249_v4 = vld [vmem:[%s1690_s11 + $0x8] sm:$0xff]  ;;  %s244_s18 = scalar_lea.vmem [#allocation8], %s1686_s10  ;;  %s1158_s6 = sshll.u32 %s1526_s16, 9 }
  0x7e   : > { %v260_v5 = vrot.slane %v248_v2, 1  ;;  %v267_v6 = vrot.slane %v248_v2, 7  ;;  %v252_v7 = vld [vmem:[%s1698_s9] sm:$0xff]  ;;  %v253_v8 = vld [vmem:[%s1698_s9 + $0x8] sm:$0xff]  ;;  %v268_v9 = vrot.slane %v249_v4, 7  ;;  %v279_v10 = vrot.slane %v249_v4, 5  ;;  %s1881_s23 = scalar_lea.hbm %s1931_s3, %s1158_s6 }
  0x7f   : > { %v289_v11 = vrot.slane %v252_v7, 1  ;;  %v295_v12 = vrot.slane %v252_v7, 7  ;;  %v250_v13 = vld [vmem:[%s1690_s11 + $0x10] sm:$0xff]  ;;  %1224 = vmatprep.subr.bf16.mxu0 %v1709_v3  ;;  %1228 = vmatprep.subr.bf16.mxu1 %v1709_v3  ;;  %v296_v15 = vrot.slane %v253_v8, 7  ;;  %v307_v16 = vrot.slane %v253_v8, 5  ;;  %v251_v42 = vld [vmem:[%s1690_s11 + $0x18] sm:$0xff] }
  0x80   : > { %v1718_v14 = vsel %vm266_vm0, %v260_v5, %v267_v6  ;;  %v261_v17 = vrot.slane %v250_v13, 1  ;;  %1226 = vmatpush3.bf16.msra.mxu0 %v1709_v3  ;;  %1230 = vmatpush3.bf16.msra.mxu1 %v1709_v3  ;;  %v1723_v18 = vsel %vm266_vm0, %v267_v6, %v268_v9  ;;  %v285_v29 = vsel %vm266_vm0, %v268_v9, %v279_v10  ;;  %v254_v51 = vld [vmem:[%s1698_s9 + $0x10] sm:$0xff]  ;;  %v255_v60 = vld [vmem:[%s1698_s9 + $0x18] sm:$0xff]  ;;  %s1009_s29 = sshll.u32 %s244_s18, 4  ;;  %s995_s16 = scalar_lea.sflag [#allocation4], %s1683_s2  ;;  %s1883_s29 = int_to_ptr.vmem [resolvable:$true] %s1009_s29 }
  0x81   : > { %v320_v19 = vrot.slane %v1718_v14, 1  ;;  %v339_v20 = vrot.slane %v1718_v14, 2  ;;  %v1728_v21 = vsel %vm266_vm0, %v289_v11, %v295_v12  ;;  %v321_v22 = vrot.slane %v1723_v18, 1  ;;  %1232 = vmatprep.subr.bf16.mxu0 %v1709_v3  ;;  %1236 = vmatprep.subr.bf16.mxu1 %v1709_v3  ;;  %s1401_s27 = scalar_lea.vmem %s1883_s29, 512  ;;  %s1482_s5 = smov [#allocation8]  }
  0x82   : > { %v340_v23 = vrot.slane %v1723_v18, 2  ;;  %v1733_v24 = vsel %vm266_vm0, %v295_v12, %v296_v15  ;;  %v463_v25 = vrot.slane %v1728_v21, 1  ;;  %v481_v27 = vrot.slane %v1728_v21, 2  ;;  %p1402_p3 = scmp.ne.s32.totalorder %s1883_s29, %s1401_s27  ;;  %s1405_s8 = sshll.u32 %s1482_s5, 4  ;;  %s1406_s8 = int_to_ptr.vmem [resolvable:$false] %s1405_s8 }
  0x83   : > { %v464_v26 = vrot.slane %v1733_v24, 1  ;;  %v482_v28 = vrot.slane %v1733_v24, 2  ;;  %v322_v30 = vsel %vm319_vm1, %v320_v19, %v321_v22  ;;  %v323_v32 = vrot.slane %v285_v29, 1  ;;  %s1407_s28 = scalar_lea.vmem %s1406_s8, 1024  ;;  %p1408_p1 = scmp.lt.s32.totalorder %s1883_s29, %s1406_s8 }
  0x84   : > { %v341_v31 = vsel %vm338_vm2, %v339_v20, %v340_v23  ;;  %v342_v33 = vrot.slane %v285_v29, 2  ;;  %v334_v34 = vadd.f32 %v322_v30, %v1718_v14  ;;  %v614_v37 = vmul.f32 %v285_v29, %v285_v29  ;;  %p1403_p7 = pnand %p1402_p3, %p1591_p12  ;;  %p1409_p5 = scmp.lt.s32.totalorder %s1407_s28, %s1401_s27 }
  0x85   : > { %v465_v35 = vsel %vm319_vm1, %v463_v25, %v464_v26  ;;  %v483_v36 = vsel %vm338_vm2, %v481_v27, %v482_v28  ;;  %v324_v39 = vsel %vm319_vm1, %v321_v22, %v323_v32  ;;  %v313_v41 = vsel %vm266_vm0, %v296_v15, %v307_v16 }
  0x86   : > { %v477_v38 = vadd.f32 %v465_v35, %v1728_v21  ;;  %v343_v40 = vsel %vm338_vm2, %v340_v23, %v342_v33  ;;  %v353_v43 = vadd.f32 %v341_v31, %v334_v34  ;;  %v335_v44 = vadd.f32 %v324_v39, %v1723_v18  ;;  %p1404_p9 = pneg %p1403_p7  ;;  %p1410_p2 = por %p1409_p5, %p1408_p1 }
  0x87   : > { %v466_v45 = vrot.slane %v313_v41, 1  ;;  %v484_v46 = vrot.slane %v313_v41, 2  ;;  %v620_v48 = vmul.f32 %v313_v41, %v313_v41  ;;  %v1753_v49 = vmul.f32 %v313_v41, %v285_v29 }
  0x88   : > { %v495_v47 = vadd.f32 %v483_v36, %v477_v38  ;;  %v270_v50 = vrot.slane %v250_v13, 7  ;;  %1187 = vmatprep.mubr.msk.f32.mxu0 %vm357_vm3, %v353_v43  ;;  %v354_v52 = vadd.f32 %v343_v40, %v335_v44  ;;  %v271_v55 = vrot.slane %v251_v42, 7  ;;  %p1411_p6 = pnand %p1410_p2, %p1404_p9 }
  0x89   : > { %v467_v53 = vsel %vm319_vm1, %v464_v26, %v466_v45  ;;  %v485_v54 = vsel %vm338_vm2, %v482_v28, %v484_v46  ;;  %v1761_v57 = vadd.f32 %v620_v48, %v614_v37  ;;  %v796_v58 = vrot.slane %v1753_v49, 1 }
  0x8a   : > { %1197 = vmatprep.mubr.msk.f32.mxu1 %vm357_vm3, %v495_v47  ;;  %v478_v56 = vadd.f32 %v467_v53, %v1733_v24  ;;  %v1765_v59 = vsel %vm266_vm0, %v261_v17, %v270_v50  ;;  %1188 = vmatmul.mubr.msk.f32.vlgmr.msra.gmra.mrb[0].mxu0 %vm357_vm3, %v354_v52  ;;  %v1770_v61 = vsel %vm266_vm0, %v270_v50, %v271_v55  ;;  %v290_v0 = vrot.slane %v254_v51, 1 }
  0x8b   : > { %v325_v62 = vrot.slane %v1765_v59, 1  ;;  %v344_v63 = vrot.slane %v1765_v59, 2  ;;  %1234 = vmatpush3.bf16.msra.mxu0 %v1709_v3  ;;  %v326_v2 = vrot.slane %v1770_v61, 1  ;;  %v345_v4 = vrot.slane %v1770_v61, 2 }
  0x8c   : > { %v496_v1 = vadd.f32 %v485_v54, %v478_v56  ;;  %v298_v5 = vrot.slane %v254_v51, 7  ;;  %v299_v6 = vrot.slane %v255_v60, 7  ;;  %v280_v7 = vrot.slane %v251_v42, 5 }
  0x8d   : > { %v308_v8 = vrot.slane %v255_v60, 5  ;;  %v612_v9 = vmul.f32 %v1718_v14, %v1718_v14  ;;  %v327_v10 = vsel %vm319_vm1, %v325_v62, %v326_v2  ;;  %v346_v11 = vsel %vm338_vm2, %v344_v63, %v345_v4 }
  0x8e   : > { %1198 = vmatmul.mubr.msk.f32.vlgmr.msra.gmra.mrb[0].mxu1 %vm357_vm3, %v496_v1  ;;  %v1783_v12 = vsel %vm266_vm0, %v290_v0, %v298_v5  ;;  %v613_v13 = vmul.f32 %v1723_v18, %v1723_v18  ;;  %v336_v15 = vadd.f32 %v327_v10, %v1765_v59  ;;  %v1789_v16 = vsel %vm266_vm0, %v298_v5, %v299_v6 }
  0x8f   : > { %v468_v17 = vrot.slane %v1783_v12, 1  ;;  %v486_v19 = vrot.slane %v1783_v12, 2  ;;  %1238 = vmatpush3.bf16.msra.mxu1 %v1709_v3  ;;  %v469_v20 = vrot.slane %v1789_v16, 1  ;;  %v487_v22 = vrot.slane %v1789_v16, 2 }
  0x90   : > { %v1797_v23 = vsel %vm266_vm0, %v271_v55, %v280_v7  ;;  %v1800_v25 = vsel %vm266_vm0, %v299_v6, %v308_v8  ;;  %v355_v26 = vadd.f32 %v346_v11, %v336_v15  ;;  %v618_v32 = vmul.f32 %v1728_v21, %v1728_v21 }
  0x91   : > { %v328_v27 = vrot.slane %v1797_v23, 1  ;;  %v347_v28 = vrot.slane %v1797_v23, 2  ;;  %v471_v29 = vrot.slane %v1800_v25, 1  ;;  %v470_v30 = vsel %vm319_vm1, %v468_v17, %v469_v20 }
  0x92   : > { %v488_v3 = vsel %vm338_vm2, %v486_v19, %v487_v22  ;;  %v489_v31 = vrot.slane %v1800_v25, 2  ;;  %1190 = vmatprep.mubr.msk.f32.mxu0 %vm357_vm3, %v355_v26  ;;  %v479_v33 = vadd.f32 %v470_v30, %v1783_v12  ;;  %v619_v40 = vmul.f32 %v1733_v24, %v1733_v24 }
  0x93   : > { %v329_v34 = vsel %vm319_vm1, %v326_v2, %v328_v27  ;;  %v348_v35 = vsel %vm338_vm2, %v345_v4, %v347_v28  ;;  %v472_v36 = vsel %vm319_vm1, %v469_v20, %v471_v29  ;;  %v624_v42 = vadd.f32 %v618_v32, %v612_v9 }
  0x94   : > { %v337_v37 = vadd.f32 %v329_v34, %v1770_v61  ;;  %v480_v38 = vadd.f32 %v472_v36, %v1789_v16  ;;  %v490_v39 = vsel %vm338_vm2, %v487_v22, %v489_v31  ;;  %v497_v41 = vadd.f32 %v488_v3, %v479_v33 }
  0x95   : > { %v639_v43 = vrot.slane %v1761_v57, 1  ;;  %v657_v44 = vrot.slane %v1761_v57, 2  ;;  %v625_v47 = vadd.f32 %v619_v40, %v613_v13  ;;  %v781_v48 = vmul.f32 %v1728_v21, %v1718_v14 }
  0x96   : > { %v356_v45 = vadd.f32 %v348_v35, %v337_v37  ;;  %v498_v46 = vadd.f32 %v490_v39, %v480_v38  ;;  %1200 = vmatprep.mubr.msk.f32.mxu1 %vm357_vm3, %v497_v41  ;;  %v636_v50 = vrot.slane %v624_v42, 1  ;;  %v654_v51 = vrot.slane %v624_v42, 2 }
  0x97   : > { %v782_v52 = vmul.f32 %v1733_v24, %v1723_v18  ;;  %v814_v53 = vrot.slane %v1753_v49, 2  ;;  %v637_v54 = vrot.slane %v625_v47, 1  ;;  %v655_v55 = vrot.slane %v625_v47, 2 }
  0x98   : > { %1191 = vmatmul.mubr.msk.f32.gmra.mrb[2].mxu0 %vm357_vm3, %v356_v45  ;;  %1201 = vmatmul.mubr.msk.f32.gmra.mrb[2].mxu1 %vm357_vm3, %v498_v46  ;;  %v793_v56 = vrot.slane %v781_v48, 1  ;;  %v811_v57 = vrot.slane %v781_v48, 2  ;;  %v615_v14 = vmul.f32 %v1765_v59, %v1765_v59  ;;  %v616_v21 = vmul.f32 %v1770_v61, %v1770_v61 }
  0x99   : > { %v794_v60 = vrot.slane %v782_v52, 1  ;;  %v812_v62 = vrot.slane %v782_v52, 2  ;;  %v638_v18 = vsel %vm319_vm1, %v636_v50, %v637_v54  ;;  %v640_v24 = vsel %vm319_vm1, %v637_v54, %v639_v43 }
  0x9a   : > { %v656_v63 = vsel %vm338_vm2, %v654_v51, %v655_v55  ;;  %v658_v0 = vsel %vm338_vm2, %v655_v55, %v657_v44  ;;  %v650_v1 = vadd.f32 %v638_v18, %v624_v42  ;;  %v651_v8 = vadd.f32 %v640_v24, %v625_v47 }
  0x9b   : > { %v795_v2 = vsel %vm319_vm1, %v793_v56, %v794_v60  ;;  %v797_v4 = vsel %vm319_vm1, %v794_v60, %v796_v58  ;;  %v813_v5 = vsel %vm338_vm2, %v811_v57, %v812_v62  ;;  %v815_v7 = vsel %vm338_vm2, %v812_v62, %v814_v53 }
  0x9c   : > { %v807_v6 = vadd.f32 %v795_v2, %v781_v48  ;;  %v808_v9 = vadd.f32 %v797_v4, %v782_v52  ;;  %v668_v10 = vadd.f32 %v656_v63, %v650_v1  ;;  %v621_v11 = vmul.f32 %v1783_v12, %v1783_v12 }
  0x9d   : > { %v622_v13 = vmul.f32 %v1789_v16, %v1789_v16  ;;  %v784_v15 = vmul.f32 %v1783_v12, %v1765_v59  ;;  %v669_v17 = vadd.f32 %v658_v0, %v651_v8  ;;  %v785_v19 = vmul.f32 %v1789_v16, %v1770_v61 }
  0x9e   : > { %v825_v49 = vadd.f32 %v813_v5, %v807_v6  ;;  %v826_v58 = vadd.f32 %v815_v7, %v808_v9  ;;  %1207 = vmatprep.mubr.msk.f32.mxu0 %vm357_vm3, %v668_v10  ;;  %v627_v20 = vadd.f32 %v621_v11, %v615_v14  ;;  %v617_v59 = vmul.f32 %v1797_v23, %v1797_v23 }
  0x9f   : > { %v628_v22 = vadd.f32 %v622_v13, %v616_v21  ;;  %v798_v26 = vrot.slane %v784_v15, 1  ;;  %v816_v27 = vrot.slane %v784_v15, 2  ;;  %1208 = vmatmul.mubr.msk.f32.vlgmr.msra.gmra.mrb[4].mxu0 %vm357_vm3, %v669_v17  ;;  %v799_v28 = vrot.slane %v785_v19, 1 }
  0xa0   : > { %1217 = vmatprep.mubr.msk.f32.mxu1 %vm357_vm3, %v825_v49  ;;  %v817_v29 = vrot.slane %v785_v19, 2  ;;  %v623_v12 = vmul.f32 %v1800_v25, %v1800_v25  ;;  %v641_v61 = vrot.slane %v627_v20, 1  ;;  %v659_v30 = vrot.slane %v627_v20, 2 }
  0xa1   : > { %1218 = vmatmul.mubr.msk.f32.vlgmr.msra.gmra.mrb[4].mxu1 %vm357_vm3, %v826_v58  ;;  %v642_v16 = vrot.slane %v628_v22, 1  ;;  %v660_v3 = vrot.slane %v628_v22, 2  ;;  %v800_v31 = vsel %vm319_vm1, %v798_v26, %v799_v28  ;;  %v786_v34 = vmul.f32 %v1800_v25, %v1797_v23 }
  0xa2   : > { %v818_v32 = vsel %vm338_vm2, %v816_v27, %v817_v29  ;;  %v629_v33 = vadd.f32 %v623_v12, %v617_v59  ;;  %v809_v37 = vadd.f32 %v800_v31, %v784_v15 }
  0xa3   : > { %v643_v35 = vsel %vm319_vm1, %v641_v61, %v642_v16  ;;  %v661_v36 = vsel %vm338_vm2, %v659_v30, %v660_v3  ;;  %v801_v41 = vrot.slane %v786_v34, 1  ;;  %v819_v43 = vrot.slane %v786_v34, 2 }
  0xa4   : > { %v652_v38 = vadd.f32 %v643_v35, %v627_v20  ;;  %v644_v39 = vrot.slane %v629_v33, 1  ;;  %v662_v40 = vrot.slane %v629_v33, 2  ;;  %v827_v42 = vadd.f32 %v818_v32, %v809_v37 }
  0xa5   : > { %v802_v47 = vsel %vm319_vm1, %v799_v28, %v801_v41  ;;  %v820_v48 = vsel %vm338_vm2, %v817_v29, %v819_v43 }
  0xa6   : > { %v670_v44 = vadd.f32 %v661_v36, %v652_v38  ;;  %v645_v45 = vsel %vm319_vm1, %v642_v16, %v644_v39  ;;  %v663_v46 = vsel %vm338_vm2, %v660_v3, %v662_v40  ;;  %1220 = vmatprep.mubr.msk.f32.mxu1 %vm357_vm3, %v827_v42  ;;  %v810_v25 = vadd.f32 %v802_v47, %v785_v19 }
  0xa7   : > { %v653_v23 = vadd.f32 %v645_v45, %v628_v22 }
  0xa8   : > { %1210 = vmatprep.mubr.msk.f32.mxu0 %vm357_vm3, %v670_v44  ;;  %v828_v51 = vadd.f32 %v820_v48, %v810_v25 }
  0xa9   : > { %v671_v50 = vadd.f32 %v663_v46, %v653_v23 }
  0xaa   : > { %1221 = vmatmul.mubr.msk.f32.gmra.mrb[6].mxu1 %vm357_vm3, %v828_v51 }
  0xab   : > { %1211 = vmatmul.mubr.msk.f32.gmra.mrb[6].mxu0 %vm357_vm3, %v671_v50 }
 0x15d   : > { %v1189_v52 = vpop.f32.mrb[0].mxu0 }
 0x15e   : > { %v456_v53 = vmul.f32 0.11111111, %v1189_v52  ;;  %v436_v54 = vpop.f32.mrb[1].mxu0 }
 0x15f   : > { %v455_v55 = vmul.f32 0.11111111, %v436_v54 }
 0x160   : > { %v601_v57 = vmul.f32 %v456_v53, %v456_v53 }
 0x161   : > { %v1199_v56 = vpop.f32.mrb[0].mxu1  ;;  %v600_v14 = vmul.f32 %v455_v55, %v455_v55 }
 0x162   : > { %v597_v60 = vmul.f32 0.11111111, %v1199_v56  ;;  %v577_v62 = vpop.f32.mrb[1].mxu1 }
 0x163   : > { %v596_v21 = vmul.f32 0.11111111, %v577_v62 }
 0x164   : > { %v605_v18 = vmul.f32 %v597_v60, %v597_v60  ;;  %v609_v24 = vmul.f32 %v597_v60, %v456_v53 }
 0x165   : > { %v604_v63 = vmul.f32 %v596_v21, %v596_v21  ;;  %v608_v0 = vmul.f32 %v596_v21, %v455_v55 }
 0x166   : > { %v774_v1 = vadd.f32 %v605_v18, %v601_v57  ;;  %v935_v3 = vmul.f32 2.0, %v609_v24 }
 0x167   : > { %v773_v2 = vadd.f32 %v604_v63, %v600_v14  ;;  %v934_v33 = vmul.f32 2.0, %v608_v0 }
 0x168   : > { %v955_v34 = vadd.f32 0.0001, %v774_v1  ;;  %v939_v42 = vadd.f32 0.0001, %v935_v3 }
 0x169   : > { %v954_v38 = vadd.f32 0.0001, %v773_v2  ;;  %v938_v45 = vadd.f32 0.0001, %v934_v33 }
 0x16b   : > { %v1192_v4 = vpop.f32.mrb[2].mxu0  ;;  %v1202_v5 = vpop.f32.mrb[2].mxu1 }
 0x16c   : > { %v458_v6 = vmul.f32 0.11111111, %v1192_v4  ;;  %v599_v7 = vmul.f32 0.11111111, %v1202_v5  ;;  %v446_v8 = vpop.f32.mrb[3].mxu0  ;;  %v587_v9 = vpop.f32.mrb[3].mxu1 }
 0x16d   : > { %v457_v10 = vmul.f32 0.11111111, %v446_v8  ;;  %v598_v11 = vmul.f32 0.11111111, %v587_v9 }
 0x16e   : > { %v603_v13 = vmul.f32 %v458_v6, %v458_v6  ;;  %v607_v15 = vmul.f32 %v599_v7, %v599_v7  ;;  %v611_v49 = vmul.f32 %v599_v7, %v458_v6 }
 0x16f   : > { %v602_v17 = vmul.f32 %v457_v10, %v457_v10  ;;  %v606_v58 = vmul.f32 %v598_v11, %v598_v11  ;;  %v610_v19 = vmul.f32 %v598_v11, %v457_v10 }
 0x170   : > { %v776_v20 = vadd.f32 %v607_v15, %v603_v13  ;;  %v937_v56 = vmul.f32 2.0, %v611_v49 }
 0x171   : > { %v775_v22 = vadd.f32 %v606_v58, %v602_v17  ;;  %v936_v62 = vmul.f32 2.0, %v610_v19 }
 0x172   : > { %v1209_v26 = vpop.f32.mrb[4].mxu0  ;;  %v957_v18 = vadd.f32 0.0001, %v776_v20  ;;  %v941_v4 = vadd.f32 0.0001, %v937_v56 }
 0x173   : > { %v770_v27 = vmul.f32 0.11111111, %v1209_v26  ;;  %v750_v29 = vpop.f32.mrb[5].mxu0  ;;  %v940_v8 = vadd.f32 0.0001, %v936_v62 }
 0x174   : > { %v1219_v28 = vpop.f32.mrb[4].mxu1  ;;  %v769_v12 = vmul.f32 0.11111111, %v750_v29 }
 0x175   : > { %v927_v59 = vmul.f32 0.11111111, %v1219_v28  ;;  %v907_v61 = vpop.f32.mrb[5].mxu1  ;;  %v778_v16 = vsub.f32 %v770_v27, %v774_v1 }
 0x176   : > { %v926_v30 = vmul.f32 0.11111111, %v907_v61  ;;  %v777_v32 = vsub.f32 %v769_v12, %v773_v2 }
 0x177   : > { %v931_v31 = vsub.f32 %v927_v59, %v609_v24  ;;  %v959_v35 = vadd.f32 0.0009, %v778_v16 }
 0x178   : > { %v930_v36 = vsub.f32 %v926_v30, %v608_v0  ;;  %v958_v39 = vadd.f32 0.0009, %v777_v32  ;;  %v956_v0 = vadd.f32 0.0001, %v775_v22 }
 0x179   : > { %v943_v37 = vmul.f32 2.0, %v931_v31  ;;  %v963_v40 = vmul.f32 %v959_v35, %v955_v34 }
 0x17a   : > { %v942_v41 = vmul.f32 2.0, %v930_v36  ;;  %v962_v44 = vmul.f32 %v958_v39, %v954_v38 }
 0x17b   : > { %v947_v43 = vadd.f32 0.0009, %v943_v37  ;;  %1305 = vrcp.f32 %v963_v40 }
 0x17c   : > { %v946_v46 = vadd.f32 0.0009, %v942_v41  ;;  %1307 = vrcp.f32 %v962_v44 }
 0x17d   : > { %v951_v47 = vmul.f32 %v947_v43, %v939_v42  ;;  %v1222_v48 = vpop.f32.mrb[6].mxu1 }
 0x17e   : > { %v950_v23 = vmul.f32 %v946_v46, %v938_v45  ;;  %v1212_v25 = vpop.f32.mrb[6].mxu0  ;;  %v929_v51 = vmul.f32 0.11111111, %v1222_v48  ;;  %v917_v53 = vpop.f32.mrb[7].mxu1 }
 0x17f   : > { %v772_v50 = vmul.f32 0.11111111, %v1212_v25  ;;  %v760_v52 = vpop.f32.mrb[7].mxu0  ;;  %v928_v55 = vmul.f32 0.11111111, %v917_v53 }
 0x180   : > { %v771_v54 = vmul.f32 0.11111111, %v760_v52  ;;  %v933_v60 = vsub.f32 %v929_v51, %v611_v49 }
 0x181   : > { %v780_v57 = vsub.f32 %v772_v50, %v776_v20  ;;  %v932_v21 = vsub.f32 %v928_v55, %v610_v19 }
 0x182   : > { %v779_v14 = vsub.f32 %v771_v54, %v775_v22  ;;  %v945_v63 = vmul.f32 2.0, %v933_v60 }
 0x183   : > { %v961_v24 = vadd.f32 0.0009, %v780_v57  ;;  %v944_v2 = vmul.f32 2.0, %v932_v21 }
 0x184   : > { %v960_v1 = vadd.f32 0.0009, %v779_v14  ;;  %v949_v6 = vadd.f32 0.0009, %v945_v63 }
 0x185   : > { %v965_v5 = vmul.f32 %v961_v24, %v957_v18  ;;  %v1306_v7 = vpop.eup %1305  ;;  %v948_v10 = vadd.f32 0.0009, %v944_v2 }
 0x186   : > { %v964_v9 = vmul.f32 %v960_v1, %v956_v0  ;;  %v1308_v11 = vpop.eup %1307  ;;  %v969_v13 = vmul.f32 %v1306_v7, %v951_v47  ;;  %v953_v15 = vmul.f32 %v949_v6, %v941_v4 }
 0x187   : > { %1309 = vrcp.f32 %v965_v5  ;;  %v967_v49 = vmul.f32 %v1308_v11, %v950_v23  ;;  %v952_v17 = vmul.f32 %v948_v10, %v940_v8 }
 0x188   : > { %1311 = vrcp.f32 %v964_v9  ;;  %v975_v58 = vsub.f32 1.0, %v969_v13 }
 0x189   : > { %v974_v19 = vsub.f32 1.0, %v967_v49 }
 0x18a   : > { %v979_v20 = vmul.f32 0.5, %v975_v58 }
 0x18b   : > { %v978_v22 = vmul.f32 0.5, %v974_v19 }
 0x18c   : > { %v983_v26 = vmax.f32 %v979_v20, 0.0 }
 0x18d   : > { %v982_v27 = vmax.f32 %v978_v22, 0.0 }
 0x18e   : > { %v987_v28 = vmin.f32 %v983_v26, 1.0 }
 0x18f   : > { %v986_v29 = vmin.f32 %v982_v27, 1.0 }
 0x190   : > { %991 = vst.msk [vmem:[%s244_s18 + $0x8] sm:$0xff] %vm357_vm3, %v987_v28 }
 0x191   : > { %v1310_v59 = vpop.eup %1309  ;;  %990 = vst.msk [vmem:[%s244_s18] sm:$0xff] %vm357_vm3, %v986_v29 }
 0x192   : > { %v1312_v12 = vpop.eup %1311  ;;  %v973_v61 = vmul.f32 %v1310_v59, %v953_v15 }
 0x193   : > { %v971_v16 = vmul.f32 %v1312_v12, %v952_v17 }
 0x194   : > { %v977_v30 = vsub.f32 1.0, %v973_v61 }
 0x195   : > { %v976_v3 = vsub.f32 1.0, %v971_v16 }
 0x196   : > { %v981_v31 = vmul.f32 0.5, %v977_v30 }
 0x197   : > { %v980_v32 = vmul.f32 0.5, %v976_v3 }
 0x198   : > { %v985_v33 = vmax.f32 %v981_v31, 0.0 }
 0x199   : > { %v984_v34 = vmax.f32 %v980_v32, 0.0 }
 0x19a   : > { %v989_v35 = vmin.f32 %v985_v33, 1.0 }
 0x19b   : > { %v988_v36 = vmin.f32 %v984_v34, 1.0 }
 0x19c   : > { %993 = vst.msk [vmem:[%s244_s18 + $0x18] sm:$0xff] %vm357_vm3, %v989_v35 }
 0x19d   : > { %992 = vst.msk [vmem:[%s244_s18 + $0x10] sm:$0xff] %vm357_vm3, %v988_v36 }
 0x19e   : > { %1414 = shalt.err (!%p1411_p6)
}
 0x19f   : > { %s1415_s22 = scalar_lea.hbm %s1881_s23, 512  ;;  %s1419_s10 = scalar_lea.hbm %s1931_s3, 2048 }
 0x1a0   : > { %p1416_p8 = scmp.ne.s32.totalorder %s1881_s23, %s1415_s22  ;;  %p1420_p4 = scmp.lt.u32.totalorder %s1881_s23, %s1931_s3 }
 0x1a1   : > { %p1421_p10 = scmp.lt.u32.totalorder %s1419_s10, %s1415_s22  ;;  %p1423_p3 = scmp.lt.u32.totalorder %s1415_s22, %s1881_s23 }
 0x1a2   : > { %p1417_p11 = pnand %p1416_p8, %p1591_p12 }
 0x1a3   : > { %p1422_p13 = por %p1421_p10, %p1420_p4 }
 0x1a4   : > { %p1418_p0 = pneg %p1417_p11 }
 0x1a5   : > { %p1424_p7 = por %p1423_p3, %p1422_p13 }
 0x1a7   : > { %p1425_p9 = pnand %p1424_p7, %p1418_p0 }
 0x1a9   : > { %1428 = shalt.err (!%p1425_p9)
}
 0x1aa   : > { %s1483_s20 = smov 128   ;;  %s1484_s7 = smov 8  }
 0x1ab   : > { %1247 = dma.vmem_to_hbm [thread:$0]  (%p1591_p12), %s1883_s29, 512, %s1881_s23, %s995_s16, %s1483_s20, %s1483_s20, %s1484_s7  }
 0x1ac PF: > { %p1267_p1 = scmp.ge.s32.totalorder %s1475_s15, 2  ;;  %s1024_s9 = sand.u32 1, %s1463_s12  }
 0x1ad   : > { %p1956_p5 = scmp.ne.s32.totalorder %s1942_s19, 0  ;;  %s1025_s18 = scalar_lea.sflag [#allocation4], %s1024_s9 }
 0x1af   : > { %p1261_p2 = pnand %p1267_p1, %p1956_p5 }
 0x1b1   : > { %1458 = dma.done.wait (!%p1261_p2), %s1025_s18, 512  }
 0x1b2   : > { %1460 = vsyncadd (!%p1261_p2), %s1025_s18, 4294966784  ;;  %p19_p6 = scmp.ge.s32.totalorder %s1558_s24, 6   ;;  %s1957_s12 = smov %s1467_s13 }
 0x1b3   : > { %s1958_s13 = smov %s1471_s14  ;;  %s1959_s14 = smov %s1587_s17 }
 0x1b4   : > { %s1960_s15 = smov %s1558_s24  ;;  %21 = sbr.rel (!%p19_p6) target bundleno = 10 (0xa), region = 94 }
 0x1bb   :  { %1030 = vsyncpa [#allocation3], 1 }
 0x1bc   :  { %1032 = vsyncpa [#allocation3 + $0x1], 1 }
 0x1bd   :  { %1033 = vsyncpa [#allocation6], 1 }
 0x1be   :  { %1035 = vsyncpa [#allocation6 + $0x1], 1 }
 0x1bf   :  { %1036 = vsyncpa [#allocation4], 1 }
 0x1c0   :  { %1038 = vsyncpa [#allocation4 + $0x1], 1 }

</bundles_post_ra>
